<compile_context>
chip_gen: v7x
topology: tpu7x:2x2x1
jax: 0.10.0
libtpu: 0.0.40
codegen_flags: <defaults>
</compile_context>

<pallas_src>
import jax
import jax.numpy as jnp
from jax.experimental import pallas as pl
from jax.experimental.pallas import tpu as pltpu

HIDDEN = 40          # logical hidden size (matches the PyTorch module)
H_PAD = 128          # lane-aligned hidden size used inside the kernel
EPS = 1e-5


def _bn_tanh(z, gamma, beta):
    """Training-mode BatchNorm1d (batch stats, biased var) fused with tanh.

    Folded into a single per-feature scale/shift so the per-element work is
    one multiply + one add (plus tanh on the EUP).
    """
    inv_n = 1.0 / z.shape[0]
    mean = jnp.sum(z, axis=0, keepdims=True) * inv_n
    mean_sq = jnp.sum(z * z, axis=0, keepdims=True) * inv_n
    var = jnp.maximum(mean_sq - mean * mean, 0.0)
    scale = gamma * jax.lax.rsqrt(var + EPS)
    shift = beta - mean * scale
    return jnp.tanh(z * scale + shift)


def mushy_kernel(
    x_ref, t_ref,
    w1_ref, g1_ref, be1_ref,
    w2_ref, g2_ref, be2_ref,
    w3_ref, g3_ref, be3_ref,
    w4_ref, b4_ref,
    out_ref,
):
    x = x_ref[...]                      # (N, 1)
    t = t_ref[...]                      # (N, 1)
    w1 = w1_ref[...]                    # (2, H_PAD)

    # Layer 1: replace the degenerate K=2 matmul with two broadcast multiplies.
    # Pre-BN bias b1 is mathematically cancelled by training-mode BN.
    z1 = x * w1[0:1, :] + t * w1[1:2, :]                    # (N, H_PAD)
    h1 = _bn_tanh(z1, g1_ref[...], be1_ref[...])

    z2 = jnp.dot(h1, w2_ref[...], preferred_element_type=jnp.float32)
    h2 = _bn_tanh(z2, g2_ref[...], be2_ref[...])

    z3 = jnp.dot(h2, w3_ref[...], preferred_element_type=jnp.float32)
    h3 = _bn_tanh(z3, g3_ref[...], be3_ref[...])

    out_ref[...] = (
        jnp.dot(h3, w4_ref[...], preferred_element_type=jnp.float32) + b4_ref[...]
    )                                                        # (N, out)


def mushydata_forward(x, t, params):
    """x: (N, 1), t: (N, 1). Whole MLP fused in one Pallas kernel."""
    x = x.astype(jnp.float32)
    t = t.astype(jnp.float32)
    n = x.shape[0]
    out_size = params["w4"].shape[1]

    args = (
        x, t,
        params["w1"], params["g1"], params["be1"],
        params["w2"], params["g2"], params["be2"],
        params["w3"], params["g3"], params["be3"],
        params["w4"], params["b4"],
    )
    vmem = pl.BlockSpec(memory_space=pltpu.MemorySpace.VMEM)
    return pl.pallas_call(
        mushy_kernel,
        out_shape=jax.ShapeDtypeStruct((n, out_size), jnp.float32),
        in_specs=[vmem] * len(args),
        out_specs=vmem,
        compiler_params=pltpu.CompilerParams(vmem_limit_bytes=32 * 1024 * 1024),
    )(*args)


def init_params(key, input_size, hidden_size, output_size, pad=H_PAD):
    """PyTorch-style init (U(-1/sqrt(fan_in), 1/sqrt(fan_in))), stored (in, out),
    zero-padded to `pad` lanes on the hidden dimension. Padded weight rows /
    columns are exactly zero, so padded channels stay 0 through BN + tanh."""
    sizes = [(input_size, hidden_size),
             (hidden_size, hidden_size),
             (hidden_size, hidden_size),
             (hidden_size, output_size)]
    raw = {}
    for idx, (fan_in, fan_out) in enumerate(sizes, start=1):
        key, kw, kb = jax.random.split(key, 3)
        bound = 1.0 / float(fan_in) ** 0.5
        raw[f"w{idx}"] = jax.random.uniform(
            kw, (fan_in, fan_out), jnp.float32, -bound, bound)
        raw[f"b{idx}"] = jax.random.uniform(
            kb, (1, fan_out), jnp.float32, -bound, bound)

    params = {}
    # w1: (input_size, hidden) -> (input_size, pad)
    params["w1"] = jnp.zeros((input_size, pad), jnp.float32
                             ).at[:, :hidden_size].set(raw["w1"])
    # w2, w3: (hidden, hidden) -> (pad, pad)
    for idx in (2, 3):
        params[f"w{idx}"] = jnp.zeros((pad, pad), jnp.float32
                                      ).at[:hidden_size, :hidden_size].set(raw[f"w{idx}"])
    # w4: (hidden, out) -> (pad, out); final bias kept.
    params["w4"] = jnp.zeros((pad, output_size), jnp.float32
                             ).at[:hidden_size, :].set(raw["w4"])
    params["b4"] = raw["b4"]
    # BatchNorm affine params (PyTorch defaults), padded channels harmless.
    for idx in (1, 2, 3):
        params[f"g{idx}"] = jnp.ones((1, pad), jnp.float32)
        params[f"be{idx}"] = jnp.zeros((1, pad), jnp.float32)
    # Keep the raw (unpadded) linear params for the reference check.
    params["_raw"] = raw
    return params


def _reference_forward(x, t, raw, hidden_size):
    """Pure-JAX replica of the PyTorch module (WITH the pre-BN biases) used to
    verify both the bias-cancellation and the zero-padding are exact."""
    def bn_tanh(z):
        mean = jnp.mean(z, axis=0, keepdims=True)
        var = jnp.mean((z - mean) ** 2, axis=0, keepdims=True)
        return jnp.tanh((z - mean) / jnp.sqrt(var + EPS))

    h = jnp.concatenate([x, t], axis=1).astype(jnp.float32)
    h = bn_tanh(h @ raw["w1"] + raw["b1"])
    h = bn_tanh(h @ raw["w2"] + raw["b2"])
    h = bn_tanh(h @ raw["w3"] + raw["b3"])
    return h @ raw["w4"] + raw["b4"]


if __name__ == "__main__":
    key = jax.random.PRNGKey(0)
    k_param, k_x, k_t = jax.random.split(key, 3)

    batch = 64
    input_size = 2      # cat([x, t], dim=1) with x:(N,1), t:(N,1)
    output_size = 1

    params = init_params(k_param, input_size, HIDDEN, output_size)
    x = jax.random.normal(k_x, (batch, 1), jnp.float32)
    t = jax.random.normal(k_t, (batch, 1), jnp.float32)

    out = mushydata_forward(x, t, params)
    jax.block_until_ready(out)
    assert out.shape == (batch, output_size)

    ref = _reference_forward(x, t, params["_raw"], HIDDEN)
    assert jnp.allclose(out, ref, atol=1e-4, rtol=1e-4)

    print("KERNEL_OK")
</pallas_src>

<mosaic_0001>
module attributes {stable_mosaic.version = 11 : i64} {
  func.func @mushy_kernel(%arg0: memref<64x1xf32, #tpu.memory_space<vmem>>, %arg1: memref<64x1xf32, #tpu.memory_space<vmem>>, %arg2: memref<2x128xf32, #tpu.memory_space<vmem>>, %arg3: memref<1x128xf32, #tpu.memory_space<vmem>>, %arg4: memref<1x128xf32, #tpu.memory_space<vmem>>, %arg5: memref<128x128xf32, #tpu.memory_space<vmem>>, %arg6: memref<1x128xf32, #tpu.memory_space<vmem>>, %arg7: memref<1x128xf32, #tpu.memory_space<vmem>>, %arg8: memref<128x128xf32, #tpu.memory_space<vmem>>, %arg9: memref<1x128xf32, #tpu.memory_space<vmem>>, %arg10: memref<1x128xf32, #tpu.memory_space<vmem>>, %arg11: memref<128x1xf32, #tpu.memory_space<vmem>>, %arg12: memref<1x1xf32, #tpu.memory_space<vmem>>, %arg13: memref<64x1xf32, #tpu.memory_space<vmem>>) attributes {dimension_semantics = [], scalar_prefetch = 0 : i64, scratch_operands = 0 : i64, tpu.core_type = #tpu.core_type<tc>} {
    %c0 = arith.constant 0 : index
    %c0_0 = arith.constant 0 : index
    %0 = vector.load %arg0[%c0, %c0_0] : memref<64x1xf32, #tpu.memory_space<vmem>>, vector<64x1xf32>
    %c0_1 = arith.constant 0 : index
    %c0_2 = arith.constant 0 : index
    %1 = vector.load %arg1[%c0_1, %c0_2] : memref<64x1xf32, #tpu.memory_space<vmem>>, vector<64x1xf32>
    %c0_3 = arith.constant 0 : index
    %c0_4 = arith.constant 0 : index
    %2 = vector.load %arg2[%c0_3, %c0_4] : memref<2x128xf32, #tpu.memory_space<vmem>>, vector<2x128xf32>
    %3 = vector.extract_strided_slice %2 {offsets = [0, 0], sizes = [1, 128], strides = [1, 1]} : vector<2x128xf32> to vector<1x128xf32>
    %4 = vector.broadcast %0 : vector<64x1xf32> to vector<64x128xf32>
    %5 = vector.broadcast %3 : vector<1x128xf32> to vector<64x128xf32>
    %6 = arith.mulf %4, %5 : vector<64x128xf32>
    %7 = vector.extract_strided_slice %2 {offsets = [1, 0], sizes = [1, 128], strides = [1, 1]} : vector<2x128xf32> to vector<1x128xf32>
    %8 = vector.broadcast %1 : vector<64x1xf32> to vector<64x128xf32>
    %9 = vector.broadcast %7 : vector<1x128xf32> to vector<64x128xf32>
    %10 = arith.mulf %8, %9 : vector<64x128xf32>
    %11 = arith.addf %6, %10 : vector<64x128xf32>
    %c0_5 = arith.constant 0 : index
    %c0_6 = arith.constant 0 : index
    %12 = vector.load %arg3[%c0_5, %c0_6] : memref<1x128xf32, #tpu.memory_space<vmem>>, vector<1x128xf32>
    %c0_7 = arith.constant 0 : index
    %c0_8 = arith.constant 0 : index
    %13 = vector.load %arg4[%c0_7, %c0_8] : memref<1x128xf32, #tpu.memory_space<vmem>>, vector<1x128xf32>
    %cst = arith.constant dense<0.000000e+00> : vector<128xf32>
    %14 = vector.multi_reduction <add>, %11, %cst [0] : vector<64x128xf32> to vector<128xf32>
    %15 = vector.shape_cast %14 : vector<128xf32> to vector<1x128xf32>
    %cst_9 = arith.constant 1.562500e-02 : f32
    %16 = vector.broadcast %cst_9 : f32 to vector<1x128xf32>
    %17 = arith.mulf %15, %16 : vector<1x128xf32>
    %18 = arith.mulf %11, %11 : vector<64x128xf32>
    %cst_10 = arith.constant dense<0.000000e+00> : vector<128xf32>
    %19 = vector.multi_reduction <add>, %18, %cst_10 [0] : vector<64x128xf32> to vector<128xf32>
    %20 = vector.shape_cast %19 : vector<128xf32> to vector<1x128xf32>
    %cst_11 = arith.constant 1.562500e-02 : f32
    %21 = vector.broadcast %cst_11 : f32 to vector<1x128xf32>
    %22 = arith.mulf %20, %21 : vector<1x128xf32>
    %23 = arith.mulf %17, %17 : vector<1x128xf32>
    %24 = arith.subf %22, %23 : vector<1x128xf32>
    %cst_12 = arith.constant 0.000000e+00 : f32
    %25 = vector.broadcast %cst_12 : f32 to vector<1x128xf32>
    %26 = arith.maximumf %24, %25 : vector<1x128xf32>
    %cst_13 = arith.constant 9.99999974E-6 : f32
    %27 = vector.broadcast %cst_13 : f32 to vector<1x128xf32>
    %28 = arith.addf %26, %27 : vector<1x128xf32>
    %29 = math.rsqrt %28 : vector<1x128xf32>
    %30 = arith.mulf %12, %29 : vector<1x128xf32>
    %31 = arith.mulf %17, %30 : vector<1x128xf32>
    %32 = arith.subf %13, %31 : vector<1x128xf32>
    %33 = vector.broadcast %30 : vector<1x128xf32> to vector<64x128xf32>
    %34 = arith.mulf %11, %33 : vector<64x128xf32>
    %35 = vector.broadcast %32 : vector<1x128xf32> to vector<64x128xf32>
    %36 = arith.addf %34, %35 : vector<64x128xf32>
    %37 = math.tanh %36 : vector<64x128xf32>
    %c0_14 = arith.constant 0 : index
    %c0_15 = arith.constant 0 : index
    %38 = vector.load %arg5[%c0_14, %c0_15] : memref<128x128xf32, #tpu.memory_space<vmem>>, vector<128x128xf32>
    %cst_16 = arith.constant dense<0.000000e+00> : vector<64x128xf32>
    %39 = tpu.matmul %37, %38, %cst_16 {dimension_numbers = #tpu.dot_dimension_numbers<[1], [0], [0], [1], [0, 0, 1, 1], [], []>} : vector<64x128xf32>, vector<128x128xf32>, vector<64x128xf32> -> vector<64x128xf32>
    %c0_17 = arith.constant 0 : index
    %c0_18 = arith.constant 0 : index
    %40 = vector.load %arg6[%c0_17, %c0_18] : memref<1x128xf32, #tpu.memory_space<vmem>>, vector<1x128xf32>
    %c0_19 = arith.constant 0 : index
    %c0_20 = arith.constant 0 : index
    %41 = vector.load %arg7[%c0_19, %c0_20] : memref<1x128xf32, #tpu.memory_space<vmem>>, vector<1x128xf32>
    %cst_21 = arith.constant dense<0.000000e+00> : vector<128xf32>
    %42 = vector.multi_reduction <add>, %39, %cst_21 [0] : vector<64x128xf32> to vector<128xf32>
    %43 = vector.shape_cast %42 : vector<128xf32> to vector<1x128xf32>
    %cst_22 = arith.constant 1.562500e-02 : f32
    %44 = vector.broadcast %cst_22 : f32 to vector<1x128xf32>
    %45 = arith.mulf %43, %44 : vector<1x128xf32>
    %46 = arith.mulf %39, %39 : vector<64x128xf32>
    %cst_23 = arith.constant dense<0.000000e+00> : vector<128xf32>
    %47 = vector.multi_reduction <add>, %46, %cst_23 [0] : vector<64x128xf32> to vector<128xf32>
    %48 = vector.shape_cast %47 : vector<128xf32> to vector<1x128xf32>
    %cst_24 = arith.constant 1.562500e-02 : f32
    %49 = vector.broadcast %cst_24 : f32 to vector<1x128xf32>
    %50 = arith.mulf %48, %49 : vector<1x128xf32>
    %51 = arith.mulf %45, %45 : vector<1x128xf32>
    %52 = arith.subf %50, %51 : vector<1x128xf32>
    %cst_25 = arith.constant 0.000000e+00 : f32
    %53 = vector.broadcast %cst_25 : f32 to vector<1x128xf32>
    %54 = arith.maximumf %52, %53 : vector<1x128xf32>
    %cst_26 = arith.constant 9.99999974E-6 : f32
    %55 = vector.broadcast %cst_26 : f32 to vector<1x128xf32>
    %56 = arith.addf %54, %55 : vector<1x128xf32>
    %57 = math.rsqrt %56 : vector<1x128xf32>
    %58 = arith.mulf %40, %57 : vector<1x128xf32>
    %59 = arith.mulf %45, %58 : vector<1x128xf32>
    %60 = arith.subf %41, %59 : vector<1x128xf32>
    %61 = vector.broadcast %58 : vector<1x128xf32> to vector<64x128xf32>
    %62 = arith.mulf %39, %61 : vector<64x128xf32>
    %63 = vector.broadcast %60 : vector<1x128xf32> to vector<64x128xf32>
    %64 = arith.addf %62, %63 : vector<64x128xf32>
    %65 = math.tanh %64 : vector<64x128xf32>
    %c0_27 = arith.constant 0 : index
    %c0_28 = arith.constant 0 : index
    %66 = vector.load %arg8[%c0_27, %c0_28] : memref<128x128xf32, #tpu.memory_space<vmem>>, vector<128x128xf32>
    %cst_29 = arith.constant dense<0.000000e+00> : vector<64x128xf32>
    %67 = tpu.matmul %65, %66, %cst_29 {dimension_numbers = #tpu.dot_dimension_numbers<[1], [0], [0], [1], [0, 0, 1, 1], [], []>} : vector<64x128xf32>, vector<128x128xf32>, vector<64x128xf32> -> vector<64x128xf32>
    %c0_30 = arith.constant 0 : index
    %c0_31 = arith.constant 0 : index
    %68 = vector.load %arg9[%c0_30, %c0_31] : memref<1x128xf32, #tpu.memory_space<vmem>>, vector<1x128xf32>
    %c0_32 = arith.constant 0 : index
    %c0_33 = arith.constant 0 : index
    %69 = vector.load %arg10[%c0_32, %c0_33] : memref<1x128xf32, #tpu.memory_space<vmem>>, vector<1x128xf32>
    %cst_34 = arith.constant dense<0.000000e+00> : vector<128xf32>
    %70 = vector.multi_reduction <add>, %67, %cst_34 [0] : vector<64x128xf32> to vector<128xf32>
    %71 = vector.shape_cast %70 : vector<128xf32> to vector<1x128xf32>
    %cst_35 = arith.constant 1.562500e-02 : f32
    %72 = vector.broadcast %cst_35 : f32 to vector<1x128xf32>
    %73 = arith.mulf %71, %72 : vector<1x128xf32>
    %74 = arith.mulf %67, %67 : vector<64x128xf32>
    %cst_36 = arith.constant dense<0.000000e+00> : vector<128xf32>
    %75 = vector.multi_reduction <add>, %74, %cst_36 [0] : vector<64x128xf32> to vector<128xf32>
    %76 = vector.shape_cast %75 : vector<128xf32> to vector<1x128xf32>
    %cst_37 = arith.constant 1.562500e-02 : f32
    %77 = vector.broadcast %cst_37 : f32 to vector<1x128xf32>
    %78 = arith.mulf %76, %77 : vector<1x128xf32>
    %79 = arith.mulf %73, %73 : vector<1x128xf32>
    %80 = arith.subf %78, %79 : vector<1x128xf32>
    %cst_38 = arith.constant 0.000000e+00 : f32
    %81 = vector.broadcast %cst_38 : f32 to vector<1x128xf32>
    %82 = arith.maximumf %80, %81 : vector<1x128xf32>
    %cst_39 = arith.constant 9.99999974E-6 : f32
    %83 = vector.broadcast %cst_39 : f32 to vector<1x128xf32>
    %84 = arith.addf %82, %83 : vector<1x128xf32>
    %85 = math.rsqrt %84 : vector<1x128xf32>
    %86 = arith.mulf %68, %85 : vector<1x128xf32>
    %87 = arith.mulf %73, %86 : vector<1x128xf32>
    %88 = arith.subf %69, %87 : vector<1x128xf32>
    %89 = vector.broadcast %86 : vector<1x128xf32> to vector<64x128xf32>
    %90 = arith.mulf %67, %89 : vector<64x128xf32>
    %91 = vector.broadcast %88 : vector<1x128xf32> to vector<64x128xf32>
    %92 = arith.addf %90, %91 : vector<64x128xf32>
    %93 = math.tanh %92 : vector<64x128xf32>
    %c0_40 = arith.constant 0 : index
    %c0_41 = arith.constant 0 : index
    %94 = vector.load %arg11[%c0_40, %c0_41] : memref<128x1xf32, #tpu.memory_space<vmem>>, vector<128x1xf32>
    %cst_42 = arith.constant dense<0.000000e+00> : vector<64x1xf32>
    %95 = tpu.matmul %93, %94, %cst_42 {dimension_numbers = #tpu.dot_dimension_numbers<[1], [0], [0], [1], [0, 0, 1, 1], [], []>} : vector<64x128xf32>, vector<128x1xf32>, vector<64x1xf32> -> vector<64x1xf32>
    %c0_43 = arith.constant 0 : index
    %c0_44 = arith.constant 0 : index
    %96 = vector.load %arg12[%c0_43, %c0_44] : memref<1x1xf32, #tpu.memory_space<vmem>>, vector<1x1xf32>
    %97 = vector.broadcast %96 : vector<1x1xf32> to vector<64x1xf32>
    %98 = arith.addf %95, %97 : vector<64x1xf32>
    %c0_45 = arith.constant 0 : index
    %c0_46 = arith.constant 0 : index
    %99 = vector.load %arg13[%c0_45, %c0_46] : memref<64x1xf32, #tpu.memory_space<vmem>>, vector<64x1xf32>
    tpu.vector_store %arg13[%c0_45, %c0_46], %98 {strides = array<i32>} : memref<64x1xf32, #tpu.memory_space<vmem>>, vector<64x1xf32>,
    return
  }
}

</mosaic_0001>

<bundles_post_ra>
// kernel: tpu_custom_call.1
= control target key start
LH: loop header
LB: loop body
LE: loop exit
PB: predicated region body
PF: predicated region fallthrough
CT: control target
= control target key end

     0   :  { %v1178_v0 = vmov 0   ;;  %v103_v41 = vlaneseq  ;;  %vm791_vm0 = vcmask 7168   ;;  %s1542_s1 = inlined_call_operand.vmem [shape: f32[64,1], index: 1, kind: input, shape index: {}]   ;;  %s1543_s0 = inlined_call_operand.vmem [shape: f32[64,1], index: 0, kind: input, shape index: {}]   ;;  %s1544_s5 = inlined_call_operand.vmem [shape: f32[128,128], index: 5, kind: input, shape index: {}]   ;;  %s1545_s2 = inlined_call_operand.vmem [shape: f32[2,128], index: 2, kind: input, shape index: {}]   ;;  %s1546_s3 = inlined_call_operand.vmem [shape: f32[1,128], index: 3, kind: input, shape index: {}]   ;;  %s1547_s4 = inlined_call_operand.vmem [shape: f32[1,128], index: 4, kind: input, shape index: {}]   ;;  %s1548_s8 = inlined_call_operand.vmem [shape: f32[128,128], index: 8, kind: input, shape index: {}]   ;;  %s1549_s6 = inlined_call_operand.vmem [shape: f32[1,128], index: 6, kind: input, shape index: {}]   ;;  %s1550_s7 = inlined_call_operand.vmem [shape: f32[1,128], index: 7, kind: input, shape index: {}]   ;;  %s1551_s11 = inlined_call_operand.vmem [shape: f32[128,1], index: 11, kind: input, shape index: {}]   ;;  %s1552_s12 = inlined_call_operand.<no memory space> [shape: f32[1,1], index: 12, kind: input, shape index: {}]   ;;  %s1553_s9 = inlined_call_operand.vmem [shape: f32[1,128], index: 9, kind: input, shape index: {}]   ;;  %s1554_s10 = inlined_call_operand.vmem [shape: f32[1,128], index: 10, kind: input, shape index: {}]   ;;  %s1555_s13 = inlined_call_operand.vmem [shape: f32[64,1], index: 13, kind: output, shape index: {}]  }
   0x1   :  { %1123 = vset.pattern.permute.xlu1 %v1178_v0  ;;  %1122 = vset.pattern.permute.xlu0 %v1178_v0  ;;  %v54_v1 = vld [vmem:[%s1542_s1] sm:$0xff]  ;;  %v55_v3 = vld [vmem:[%s1542_s1 + $0x8] sm:$0xff]  ;;  %v56_v5 = vld [vmem:[%s1542_s1 + $0x10] sm:$0xff] }
   0x2   :  { %v46_v2 = vld [vmem:[%s1543_s0] sm:$0xff]  ;;  %117 = vperm.xlu1 %1123, %v54_v1   ;;  %v47_v4 = vld [vmem:[%s1543_s0 + $0x8] sm:$0xff]  ;;  %v48_v6 = vld [vmem:[%s1543_s0 + $0x10] sm:$0xff]  ;;  %v104_v42 = vshrl.u32 %v103_v41, 7 }
   0x3   :  { %65 = vperm.xlu0 %1122, %v46_v2   ;;  %v57_v7 = vld [vmem:[%s1542_s1 + $0x18] sm:$0xff]  ;;  %v58_v9 = vld [vmem:[%s1542_s1 + $0x20] sm:$0xff]  ;;  %v59_v11 = vld [vmem:[%s1542_s1 + $0x28] sm:$0xff] }
   0x4   :  { %v49_v8 = vld [vmem:[%s1543_s0 + $0x18] sm:$0xff]  ;;  %v50_v10 = vld [vmem:[%s1543_s0 + $0x20] sm:$0xff]  ;;  %v51_v12 = vld [vmem:[%s1543_s0 + $0x28] sm:$0xff]  ;;  %v1345_v45 = vsub.s32 0, %v104_v42  ;;  %v157_v46 = vsub.s32 1, %v104_v42 }
   0x5   :  { %v60_v13 = vld [vmem:[%s1542_s1 + $0x30] sm:$0xff]  ;;  %v61_v15 = vld [vmem:[%s1542_s1 + $0x38] sm:$0xff]  ;;  %v257_v17 = vld [vmem:[%s1544_s5] sm:$0xff] }
   0x6   :  { %122 = vperm.xlu1 %1123, %v55_v3   ;;  %v52_v14 = vld [vmem:[%s1543_s0 + $0x30] sm:$0xff]  ;;  %v53_v16 = vld [vmem:[%s1543_s0 + $0x38] sm:$0xff]  ;;  %v258_v18 = vld [vmem:[%s1544_s5 + $0x8] sm:$0xff] }
   0x7   :  { %70 = vperm.xlu0 %1122, %v47_v4   ;;  %v1009_v19 = vpack.c.bf16 %v258_v18, %v257_v17  ;;  %v259_v20 = vld [vmem:[%s1544_s5 + $0x10] sm:$0xff]  ;;  %v260_v21 = vld [vmem:[%s1544_s5 + $0x18] sm:$0xff]  ;;  %v261_v23 = vld [vmem:[%s1544_s5 + $0x20] sm:$0xff] }
   0x8   :  { %v1013_v22 = vpack.c.bf16 %v260_v21, %v259_v20  ;;  %v262_v24 = vld [vmem:[%s1544_s5 + $0x28] sm:$0xff]  ;;  %v263_v26 = vld [vmem:[%s1544_s5 + $0x30] sm:$0xff]  ;;  %v264_v27 = vld [vmem:[%s1544_s5 + $0x38] sm:$0xff] }
   0x9   :  { %1010 = vmatprep.subr.bf16.mxu0 %v1009_v19  ;;  %v1017_v25 = vpack.c.bf16 %v262_v24, %v261_v23  ;;  %v1021_v28 = vpack.c.bf16 %v264_v27, %v263_v26  ;;  %v265_v29 = vld [vmem:[%s1544_s5 + $0x40] sm:$0xff]  ;;  %v266_v30 = vld [vmem:[%s1544_s5 + $0x48] sm:$0xff]  ;;  %v267_v32 = vld [vmem:[%s1544_s5 + $0x50] sm:$0xff] }
   0xa   :  { %127 = vperm.xlu1 %1123, %v56_v5   ;;  %1012 = vmatpush3.bf16.msra.mxu0 %v1009_v19  ;;  %v1025_v31 = vpack.c.bf16 %v266_v30, %v265_v29  ;;  %v268_v33 = vld [vmem:[%s1544_s5 + $0x58] sm:$0xff]  ;;  %v269_v35 = vld [vmem:[%s1544_s5 + $0x60] sm:$0xff]  ;;  %v270_v36 = vld [vmem:[%s1544_s5 + $0x68] sm:$0xff] }
   0xb   :  { %75 = vperm.xlu0 %1122, %v48_v6   ;;  %1014 = vmatprep.subr.bf16.mxu0 %v1013_v22  ;;  %v1029_v34 = vpack.c.bf16 %v268_v33, %v267_v32  ;;  %v271_v37 = vld [vmem:[%s1544_s5 + $0x70] sm:$0xff]  ;;  %v1033_v38 = vpack.c.bf16 %v270_v36, %v269_v35  ;;  %v272_v39 = vld [vmem:[%s1544_s5 + $0x78] sm:$0xff]  ;;  %v62_v49 = vld [vmem:[%s1545_s2] sm:$0x3] }
   0xc   :  { %v1037_v40 = vpack.c.bf16 %v272_v39, %v271_v37  ;;  %v158_v50 = vrot.slane %v62_v49, %v157_v46  ;;  %v106_v51 = vrot.slane %v62_v49, %v1345_v45 }
   0xe   :  { %132 = vperm.xlu1 %1123, %v57_v7   ;;  %1016 = vmatpush3.bf16.msra.mxu0 %v1013_v22 }
   0xf   :  { %80 = vperm.xlu0 %1122, %v49_v8   ;;  %1018 = vmatprep.subr.bf16.mxu0 %v1017_v25 }
  0x12   :  { %137 = vperm.xlu1 %1123, %v58_v9   ;;  %1020 = vmatpush3.bf16.msra.mxu0 %v1017_v25 }
  0x13   :  { %85 = vperm.xlu0 %1122, %v50_v10   ;;  %1022 = vmatprep.subr.bf16.mxu0 %v1021_v28 }
  0x16   :  { %142 = vperm.xlu1 %1123, %v59_v11   ;;  %1024 = vmatpush3.bf16.msra.mxu0 %v1021_v28 }
  0x17   :  { %90 = vperm.xlu0 %1122, %v51_v12   ;;  %1026 = vmatprep.subr.bf16.mxu0 %v1025_v31 }
  0x1a   :  { %147 = vperm.xlu1 %1123, %v60_v13   ;;  %1028 = vmatpush3.bf16.msra.mxu0 %v1025_v31 }
  0x1b   :  { %95 = vperm.xlu0 %1122, %v52_v14   ;;  %1030 = vmatprep.subr.bf16.mxu0 %v1029_v34 }
  0x1e   :  { %152 = vperm.xlu1 %1123, %v61_v15   ;;  %1032 = vmatpush3.bf16.msra.mxu0 %v1029_v34 }
  0x1f   :  { %100 = vperm.xlu0 %1122, %v53_v16   ;;  %1034 = vmatprep.subr.bf16.mxu0 %v1033_v38 }
  0x22   :  { %1036 = vmatpush3.bf16.msra.mxu0 %v1033_v38 }
  0x23   :  { %1038 = vmatprep.subr.bf16.mxu0 %v1037_v40 }
  0x26   :  { %1040 = vmatpush3.bf16.msra.mxu0 %v1037_v40 }
  0x81   :  { %v118_v43 = vpop.permute.xlu1 %117 }
  0x82   :  { %v66_v44 = vpop.permute.xlu0 %65  ;;  %v159_v56 = vmul.f32 %v158_v50, %v118_v43 }
  0x83   :  { %v107_v57 = vmul.f32 %v106_v51, %v66_v44 }
  0x85   :  { %v123_v47 = vpop.permute.xlu1 %122  ;;  %v1353_v1 = vadd.f32 %v159_v56, %v107_v57 }
  0x86   :  { %v71_v48 = vpop.permute.xlu0 %70  ;;  %v160_v54 = vmul.f32 %v158_v50, %v123_v47 }
  0x87   :  { %v108_v55 = vmul.f32 %v106_v51, %v71_v48  ;;  %v191_v9 = vmul.f32 %v1353_v1, %v1353_v1 }
  0x89   :  { %v128_v52 = vpop.permute.xlu1 %127  ;;  %v1351_v62 = vadd.f32 %v160_v54, %v108_v55 }
  0x8a   :  { %v76_v53 = vpop.permute.xlu0 %75  ;;  %v161_v58 = vmul.f32 %v158_v50, %v128_v52 }
  0x8b   :  { %v109_v59 = vmul.f32 %v106_v51, %v76_v53  ;;  %v192_v7 = vmul.f32 %v1351_v62, %v1351_v62  ;;  %v177_v14 = vadd.f32 %v1351_v62, %v1353_v1 }
  0x8d   :  { %v133_v60 = vpop.permute.xlu1 %132  ;;  %v1355_v2 = vadd.f32 %v161_v58, %v109_v59  ;;  %v199_v17 = vadd.f32 %v192_v7, %v191_v9  ;;  %v176_v7 = vld [vmem:[%s1547_s4] sm:$0x1] }
  0x8e   :  { %v81_v61 = vpop.permute.xlu0 %80  ;;  %v162_v63 = vmul.f32 %v158_v50, %v133_v60 }
  0x8f   :  { %v110_v0 = vmul.f32 %v106_v51, %v81_v61  ;;  %v193_v10 = vmul.f32 %v1355_v2, %v1355_v2  ;;  %v178_v19 = vadd.f32 %v177_v14, %v1355_v2 }
  0x91   :  { %v138_v3 = vpop.permute.xlu1 %137  ;;  %v1359_v8 = vadd.f32 %v162_v63, %v110_v0  ;;  %v200_v21 = vadd.f32 %v199_v17, %v193_v10 }
  0x92   :  { %v86_v4 = vpop.permute.xlu0 %85  ;;  %v163_v5 = vmul.f32 %v158_v50, %v138_v3 }
  0x93   :  { %v111_v6 = vmul.f32 %v106_v51, %v86_v4  ;;  %v194_v18 = vmul.f32 %v1359_v8, %v1359_v8  ;;  %v179_v25 = vadd.f32 %v178_v19, %v1359_v8  ;;  %v175_v4 = vld [vmem:[%s1546_s3] sm:$0x1] }
  0x95   :  { %v1365_v11 = vadd.f32 %v163_v5, %v111_v6  ;;  %v143_v12 = vpop.permute.xlu1 %142  ;;  %v201_v28 = vadd.f32 %v200_v21, %v194_v18 }
  0x96   :  { %v91_v13 = vpop.permute.xlu0 %90  ;;  %v164_v15 = vmul.f32 %v158_v50, %v143_v12 }
  0x97   :  { %v112_v16 = vmul.f32 %v106_v51, %v91_v13  ;;  %v195_v22 = vmul.f32 %v1365_v11, %v1365_v11  ;;  %v180_v29 = vadd.f32 %v179_v25, %v1365_v11 }
  0x99   :  { %v1372_v20 = vadd.f32 %v164_v15, %v112_v16  ;;  %v148_v23 = vpop.permute.xlu1 %147  ;;  %v202_v32 = vadd.f32 %v201_v28, %v195_v22 }
  0x9a   :  { %v96_v24 = vpop.permute.xlu0 %95  ;;  %v165_v26 = vmul.f32 %v158_v50, %v148_v23 }
  0x9b   :  { %v113_v27 = vmul.f32 %v106_v51, %v96_v24  ;;  %v196_v30 = vmul.f32 %v1372_v20, %v1372_v20  ;;  %v181_v35 = vadd.f32 %v180_v29, %v1372_v20 }
  0x9d   :  { %v173_v31 = vadd.f32 %v165_v26, %v113_v27  ;;  %v153_v33 = vpop.permute.xlu1 %152  ;;  %v203_v39 = vadd.f32 %v202_v32, %v196_v30 }
  0x9e   :  { %v101_v34 = vpop.permute.xlu0 %100  ;;  %v166_v37 = vmul.f32 %v158_v50, %v153_v33  ;;  %v460_v33 = vld [vmem:[%s1548_s8] sm:$0xff] }
  0x9f   :  { %v197_v36 = vmul.f32 %v173_v31, %v173_v31  ;;  %v114_v38 = vmul.f32 %v106_v51, %v101_v34  ;;  %v182_v40 = vadd.f32 %v181_v35, %v173_v31  ;;  %v461_v34 = vld [vmem:[%s1548_s8 + $0x8] sm:$0xff] }
  0xa0   :  { %v1041_v35 = vpack.c.bf16 %v461_v34, %v460_v33 }
  0xa1   :  { %v174_v41 = vadd.f32 %v166_v37, %v114_v38  ;;  %v204_v42 = vadd.f32 %v203_v39, %v197_v36  ;;  %v462_v36 = vld [vmem:[%s1548_s8 + $0x10] sm:$0xff]  ;;  %v463_v37 = vld [vmem:[%s1548_s8 + $0x18] sm:$0xff]  ;;  %v464_v39 = vld [vmem:[%s1548_s8 + $0x20] sm:$0xff] }
  0xa2   :  { %1042 = vmatprep.subr.bf16.mxu1 %v1041_v35  ;;  %v1045_v38 = vpack.c.bf16 %v463_v37, %v462_v36 }
  0xa3   :  { %v183_v43 = vadd.f32 %v182_v40, %v174_v41  ;;  %v198_v44 = vmul.f32 %v174_v41, %v174_v41  ;;  %1044 = vmatpush3.bf16.msra.mxu1 %v1041_v35  ;;  %v465_v40 = vld [vmem:[%s1548_s8 + $0x28] sm:$0xff] }
  0xa4   :  { %1046 = vmatprep.subr.bf16.mxu1 %v1045_v38 }
  0xa5   :  { %v184_v46 = vrot.slane %v183_v43, 4  ;;  %v205_v47 = vadd.f32 %v204_v42, %v198_v44  ;;  %v466_v42 = vld [vmem:[%s1548_s8 + $0x30] sm:$0xff] }
  0xa7   :  { %v185_v48 = vadd.f32 %v184_v46, %v183_v43  ;;  %v206_v49 = vrot.slane %v205_v47, 4  ;;  %1048 = vmatpush3.bf16.msra.mxu1 %v1045_v38  ;;  %v467_v43 = vld [vmem:[%s1548_s8 + $0x38] sm:$0xff]  ;;  %v468_v46 = vld [vmem:[%s1548_s8 + $0x40] sm:$0xff] }
  0xa8   :  { %v1053_v44 = vpack.c.bf16 %v467_v43, %v466_v42  ;;  %v378_v42 = vld [vmem:[%s1549_s6] sm:$0x1] }
  0xa9   :  { %v186_v52 = vrot.slane %v185_v48, 2  ;;  %v207_v53 = vadd.f32 %v206_v49, %v205_v47  ;;  %v469_v47 = vld [vmem:[%s1548_s8 + $0x48] sm:$0xff]  ;;  %v470_v49 = vld [vmem:[%s1548_s8 + $0x50] sm:$0xff] }
  0xab   :  { %v187_v54 = vadd.f32 %v186_v52, %v185_v48  ;;  %v208_v55 = vrot.slane %v207_v53, 2  ;;  %v1057_v48 = vpack.c.bf16 %v469_v47, %v468_v46  ;;  %v471_v52 = vld [vmem:[%s1548_s8 + $0x58] sm:$0xff]  ;;  %v379_v46 = vld [vmem:[%s1550_s7] sm:$0x1] }
  0xad   :  { %v188_v56 = vrot.slane %v187_v54, 1  ;;  %v209_v57 = vadd.f32 %v208_v55, %v207_v53  ;;  %v1061_v53 = vpack.c.bf16 %v471_v52, %v470_v49  ;;  %v473_v55 = vld [vmem:[%s1548_s8 + $0x68] sm:$0xff] }
  0xaf   :  { %v189_v58 = vadd.f32 %v188_v56, %v187_v54  ;;  %v210_v59 = vrot.slane %v209_v57, 1  ;;  %v472_v54 = vld [vmem:[%s1548_s8 + $0x60] sm:$0xff] }
  0xb0   :  { %v1065_v56 = vpack.c.bf16 %v473_v55, %v472_v54 }
  0xb1   :  { %v190_v50 = vmul.f32 0.015625, %v189_v58  ;;  %v211_v51 = vadd.f32 %v210_v59, %v209_v57  ;;  %v474_v57 = vld [vmem:[%s1548_s8 + $0x70] sm:$0xff]  ;;  %v475_v58 = vld [vmem:[%s1548_s8 + $0x78] sm:$0xff] }
  0xb2   :  { %v1069_v59 = vpack.c.bf16 %v475_v58, %v474_v57 }
  0xb3   :  { %v212_v60 = vmul.f32 0.015625, %v211_v51  ;;  %v213_v61 = vmul.f32 %v190_v50, %v190_v50 }
  0xb5   :  { %v214_v63 = vsub.f32 %v212_v60, %v213_v61 }
  0xb7   :  { %v215_v0 = vmax.f32 %v214_v63, 0.0 }
  0xb9   :  { %v216_v3 = vadd.f32 1e-05, %v215_v0 }
  0xbb   :  { %1124 = vrsqrt.f32 %v216_v3 }
  0xc5   :  { %v1125_v5 = vpop.eup %1124 }
  0xc6   :  { %v218_v6 = vmul.f32 %v1125_v5, %v175_v4 }
  0xc8   :  { %v219_v9 = vmul.f32 %v218_v6, %v190_v50  ;;  %v225_v10 = vrot.slane %v218_v6, %v1345_v45 }
  0xca   :  { %v220_v12 = vsub.f32 %v176_v7, %v219_v9  ;;  %v227_v14 = vmul.f32 %v225_v10, %v1353_v1  ;;  %v228_v15 = vmul.f32 %v225_v10, %v1351_v62  ;;  %v229_v16 = vmul.f32 %v225_v10, %v1355_v2 }
  0xcb   :  { %v230_v21 = vmul.f32 %v225_v10, %v1359_v8  ;;  %v231_v22 = vmul.f32 %v225_v10, %v1365_v11  ;;  %v232_v25 = vmul.f32 %v225_v10, %v1372_v20  ;;  %v233_v26 = vmul.f32 %v225_v10, %v173_v31 }
  0xcc   :  { %v239_v13 = vrot.slane %v220_v12, %v1345_v45  ;;  %v234_v2 = vmul.f32 %v225_v10, %v174_v41  ;;  %v1049_v41 = vpack.c.bf16 %v465_v40, %v464_v39 }
  0xce   :  { %v241_v17 = vadd.f32 %v239_v13, %v227_v14  ;;  %v242_v18 = vadd.f32 %v239_v13, %v228_v15  ;;  %v243_v19 = vadd.f32 %v239_v13, %v229_v16  ;;  %v244_v23 = vadd.f32 %v239_v13, %v230_v21  ;;  %1050 = vmatprep.subr.bf16.mxu1 %v1049_v41 }
  0xcf   :  { %v245_v24 = vadd.f32 %v239_v13, %v231_v22  ;;  %v246_v1 = vadd.f32 %v239_v13, %v232_v25  ;;  %v247_v62 = vadd.f32 %v239_v13, %v233_v26  ;;  %v248_v27 = vadd.f32 %v239_v13, %v234_v2  ;;  %1052 = vmatpush3.bf16.msra.mxu1 %v1049_v41 }
  0xd0   :  { %1126 = vtanh.f32 %v241_v17  ;;  %1054 = vmatprep.subr.bf16.mxu1 %v1053_v44 }
  0xd1   :  { %1128 = vtanh.f32 %v242_v18 }
  0xd2   :  { %1130 = vtanh.f32 %v243_v19 }
  0xd3   :  { %1132 = vtanh.f32 %v244_v23  ;;  %1056 = vmatpush3.bf16.msra.mxu1 %v1053_v44 }
  0xd4   :  { %1134 = vtanh.f32 %v245_v24  ;;  %1058 = vmatprep.subr.bf16.mxu1 %v1057_v48 }
  0xd5   :  { %1136 = vtanh.f32 %v246_v1 }
  0xd6   :  { %1138 = vtanh.f32 %v247_v62 }
  0xd7   :  { %1140 = vtanh.f32 %v248_v27  ;;  %1060 = vmatpush3.bf16.msra.mxu1 %v1057_v48 }
  0xd8   :  { %1062 = vmatprep.subr.bf16.mxu1 %v1061_v53 }
  0xda   :  { %v1127_v28 = vpop.eup %1126 }
  0xdb   :  { %v1129_v8 = vpop.eup %1128  ;;  %909 = vmatprep.mubr.f32.mxu0 %v1127_v28  ;;  %1064 = vmatpush3.bf16.msra.mxu1 %v1061_v53 }
  0xdc   :  { %v1131_v29 = vpop.eup %1130  ;;  %910 = vmatmul.mubr.f32.vlgmr.msra.gmra.mrb[0].mxu0 %v1129_v8  ;;  %1066 = vmatprep.subr.bf16.mxu1 %v1065_v56 }
  0xdd   :  { %912 = vmatprep.mubr.f32.mxu0 %v1131_v29  ;;  %v1133_v11 = vpop.eup %1132 }
  0xde   :  { %v1135_v30 = vpop.eup %1134 }
  0xdf   :  { %v1137_v20 = vpop.eup %1136  ;;  %1068 = vmatpush3.bf16.msra.mxu1 %v1065_v56 }
  0xe0   :  { %913 = vmatmul.mubr.f32.gmra.mrb[2].mxu0 %v1133_v11  ;;  %v1139_v31 = vpop.eup %1138  ;;  %1070 = vmatprep.subr.bf16.mxu1 %v1069_v59 }
  0xe1   :  { %915 = vmatprep.mubr.f32.mxu0 %v1135_v30  ;;  %v1141_v32 = vpop.eup %1140 }
  0xe3   :  { %1072 = vmatpush3.bf16.msra.mxu1 %v1069_v59 }
  0xe4   :  { %916 = vmatmul.mubr.f32.gmra.mrb[4].mxu0 %v1137_v20 }
  0xe5   :  { %918 = vmatprep.mubr.f32.mxu0 %v1139_v31 }
  0xe8   :  { %919 = vmatmul.mubr.f32.gmra.mrb[6].mxu0 %v1141_v32 }
 0x1af   :  { %v911_v50 = vpop.f32.mrb[0].mxu0 }
 0x1b0   :  { %v395_v51 = vmul.f32 %v911_v50, %v911_v50  ;;  %v339_v60 = vpop.f32.mrb[1].mxu0 }
 0x1b1   :  { %v380_v61 = vadd.f32 %v911_v50, %v339_v60  ;;  %v394_v63 = vmul.f32 %v339_v60, %v339_v60 }
 0x1b3   :  { %v402_v0 = vadd.f32 %v395_v51, %v394_v63  ;;  %v914_v3 = vpop.f32.mrb[2].mxu0 }
 0x1b4   :  { %v349_v4 = vpop.f32.mrb[3].mxu0  ;;  %v397_v7 = vmul.f32 %v914_v3, %v914_v3 }
 0x1b5   :  { %v381_v5 = vadd.f32 %v380_v61, %v349_v4  ;;  %v396_v6 = vmul.f32 %v349_v4, %v349_v4 }
 0x1b7   :  { %v403_v9 = vadd.f32 %v402_v0, %v396_v6  ;;  %v917_v10 = vpop.f32.mrb[4].mxu0  ;;  %v382_v12 = vadd.f32 %v914_v3, %v381_v5 }
 0x1b8   :  { %v359_v13 = vpop.f32.mrb[5].mxu0  ;;  %v399_v17 = vmul.f32 %v917_v10, %v917_v10 }
 0x1b9   :  { %v383_v14 = vadd.f32 %v382_v12, %v359_v13  ;;  %v398_v15 = vmul.f32 %v359_v13, %v359_v13  ;;  %v404_v16 = vadd.f32 %v403_v9, %v397_v7 }
 0x1bb   :  { %v405_v18 = vadd.f32 %v404_v16, %v398_v15  ;;  %v920_v19 = vpop.f32.mrb[6].mxu0  ;;  %v384_v21 = vadd.f32 %v917_v10, %v383_v14  ;;  %v663_v16 = vld [vmem:[%s1551_s11] sm:$0xff] }
 0x1bc   :  { %v369_v22 = vpop.f32.mrb[7].mxu0  ;;  %v401_v26 = vmul.f32 %v920_v19, %v920_v19 }
 0x1bd   :  { %v385_v23 = vadd.f32 %v384_v21, %v369_v22  ;;  %v400_v24 = vmul.f32 %v369_v22, %v369_v22  ;;  %v406_v25 = vadd.f32 %v405_v18, %v399_v17  ;;  %v664_v17 = vld [vmem:[%s1551_s11 + $0x8] sm:$0xff]  ;;  %v666_v21 = vld [vmem:[%s1551_s11 + $0x18] sm:$0xff] }
 0x1be   :  { %v1073_v18 = vpack.c.bf16 %v664_v17, %v663_v16 }
 0x1bf   :  { %v386_v1 = vadd.f32 %v920_v19, %v385_v23  ;;  %v407_v62 = vadd.f32 %v406_v25, %v400_v24  ;;  %v667_v23 = vld [vmem:[%s1551_s11 + $0x20] sm:$0xff]  ;;  %v668_v24 = vld [vmem:[%s1551_s11 + $0x28] sm:$0xff] }
 0x1c0   :  { %1074 = vmatprep.subr.bf16.mxu0 %v1073_v18  ;;  %1105 = vmatprep.subr.bf16.mxu1 %v1073_v18  ;;  %v1081_v25 = vpack.c.bf16 %v668_v24, %v667_v23 }
 0x1c1   :  { %v387_v2 = vrot.slane %v386_v1, 4  ;;  %v408_v27 = vadd.f32 %v407_v62, %v401_v26  ;;  %1076 = vmatpush3.bf16.msra.mxu0 %v1073_v18  ;;  %v669_v26 = vld [vmem:[%s1551_s11 + $0x30] sm:$0xff] }
 0x1c3   :  { %v388_v28 = vadd.f32 %v387_v2, %v386_v1  ;;  %v409_v8 = vrot.slane %v408_v27, 4  ;;  %v670_v1 = vld [vmem:[%s1551_s11 + $0x38] sm:$0xff]  ;;  %v671_v2 = vld [vmem:[%s1551_s11 + $0x40] sm:$0xff] }
 0x1c4   :  { %v1085_v62 = vpack.c.bf16 %v670_v1, %v669_v26  ;;  %v581_v1 = vld [vmem:[%s1553_s9] sm:$0x1] }
 0x1c5   :  { %v389_v29 = vrot.slane %v388_v28, 2  ;;  %v410_v11 = vadd.f32 %v409_v8, %v408_v27  ;;  %v672_v27 = vld [vmem:[%s1551_s11 + $0x48] sm:$0xff]  ;;  %v673_v8 = vld [vmem:[%s1551_s11 + $0x50] sm:$0xff] }
 0x1c7   :  { %v390_v30 = vadd.f32 %v389_v29, %v388_v28  ;;  %v411_v20 = vrot.slane %v410_v11, 2  ;;  %v1089_v28 = vpack.c.bf16 %v672_v27, %v671_v2  ;;  %v674_v29 = vld [vmem:[%s1551_s11 + $0x58] sm:$0xff]  ;;  %v582_v27 = vld [vmem:[%s1554_s10] sm:$0x1] }
 0x1c9   :  { %v391_v31 = vrot.slane %v390_v30, 1  ;;  %v412_v32 = vadd.f32 %v411_v20, %v410_v11  ;;  %v675_v11 = vld [vmem:[%s1551_s11 + $0x60] sm:$0xff]  ;;  %v676_v20 = vld [vmem:[%s1551_s11 + $0x68] sm:$0xff] }
 0x1cb   :  { %v392_v33 = vadd.f32 %v391_v31, %v390_v30  ;;  %v413_v34 = vrot.slane %v412_v32, 1  ;;  %v1093_v30 = vpack.c.bf16 %v674_v29, %v673_v8  ;;  %v1097_v31 = vpack.c.bf16 %v676_v20, %v675_v11 }
 0x1cd   :  { %v393_v35 = vmul.f32 0.015625, %v392_v33  ;;  %v414_v36 = vadd.f32 %v413_v34, %v412_v32  ;;  %v677_v32 = vld [vmem:[%s1551_s11 + $0x70] sm:$0xff]  ;;  %v678_v33 = vld [vmem:[%s1551_s11 + $0x78] sm:$0xff] }
 0x1ce   :  { %v1101_v34 = vpack.c.bf16 %v678_v33, %v677_v32 }
 0x1cf   :  { %v415_v37 = vmul.f32 0.015625, %v414_v36  ;;  %v416_v38 = vmul.f32 %v393_v35, %v393_v35 }
 0x1d1   :  { %v417_v39 = vsub.f32 %v415_v37, %v416_v38 }
 0x1d3   :  { %v418_v40 = vmax.f32 %v417_v39, 0.0 }
 0x1d5   :  { %v419_v41 = vadd.f32 1e-05, %v418_v40 }
 0x1d7   :  { %1142 = vrsqrt.f32 %v419_v41 }
 0x1e1   :  { %v1143_v43 = vpop.eup %1142 }
 0x1e2   :  { %v421_v44 = vmul.f32 %v1143_v43, %v378_v42 }
 0x1e4   :  { %v422_v47 = vmul.f32 %v421_v44, %v393_v35  ;;  %v428_v48 = vrot.slane %v421_v44, %v1345_v45  ;;  %v18_v35 = vstv %s1552_s12 }
 0x1e5   :  { %19 = vst [vmem:[#allocation2] sm:$0x1] %v18_v35 }
 0x1e6   :  { %v423_v49 = vsub.f32 %v379_v46, %v422_v47  ;;  %v436_v52 = vmul.f32 %v428_v48, %v369_v22  ;;  %v430_v53 = vmul.f32 %v428_v48, %v339_v60  ;;  %v431_v54 = vmul.f32 %v911_v50, %v428_v48 }
 0x1e7   :  { %v432_v55 = vmul.f32 %v428_v48, %v349_v4  ;;  %v433_v56 = vmul.f32 %v914_v3, %v428_v48  ;;  %v434_v57 = vmul.f32 %v428_v48, %v359_v13  ;;  %v435_v58 = vmul.f32 %v917_v10, %v428_v48 }
 0x1e8   :  { %v442_v59 = vrot.slane %v423_v49, %v1345_v45  ;;  %v437_v51 = vmul.f32 %v920_v19, %v428_v48  ;;  %v665_v19 = vld [vmem:[%s1551_s11 + $0x10] sm:$0xff] }
 0x1e9   :  { %v1077_v22 = vpack.c.bf16 %v666_v21, %v665_v19 }
 0x1ea   :  { %v450_v61 = vadd.f32 %v442_v59, %v436_v52  ;;  %v444_v63 = vadd.f32 %v442_v59, %v430_v53  ;;  %v445_v0 = vadd.f32 %v442_v59, %v431_v54  ;;  %v446_v5 = vadd.f32 %v442_v59, %v432_v55 }
 0x1eb   :  { %v447_v6 = vadd.f32 %v442_v59, %v433_v56  ;;  %v448_v7 = vadd.f32 %v442_v59, %v434_v57  ;;  %v449_v9 = vadd.f32 %v442_v59, %v435_v58  ;;  %v451_v12 = vadd.f32 %v442_v59, %v437_v51  ;;  %1078 = vmatprep.subr.bf16.mxu0 %v1077_v22 }
 0x1ec   :  { %1144 = vtanh.f32 %v444_v63  ;;  %1080 = vmatpush3.bf16.msra.mxu0 %v1077_v22 }
 0x1ed   :  { %1146 = vtanh.f32 %v445_v0  ;;  %1082 = vmatprep.subr.bf16.mxu0 %v1081_v25 }
 0x1ee   :  { %1148 = vtanh.f32 %v446_v5 }
 0x1ef   :  { %1150 = vtanh.f32 %v447_v6 }
 0x1f0   :  { %1152 = vtanh.f32 %v448_v7  ;;  %1084 = vmatpush3.bf16.msra.mxu0 %v1081_v25 }
 0x1f1   :  { %1154 = vtanh.f32 %v449_v9  ;;  %1086 = vmatprep.subr.bf16.mxu0 %v1085_v62 }
 0x1f2   :  { %1156 = vtanh.f32 %v450_v61 }
 0x1f3   :  { %1158 = vtanh.f32 %v451_v12 }
 0x1f4   :  { %1088 = vmatpush3.bf16.msra.mxu0 %v1085_v62 }
 0x1f5   :  { %1090 = vmatprep.subr.bf16.mxu0 %v1089_v28 }
 0x1f6   :  { %v1145_v50 = vpop.eup %1144 }
 0x1f7   :  { %v1147_v60 = vpop.eup %1146  ;;  %953 = vmatprep.mubr.f32.mxu1 %v1145_v50 }
 0x1f8   :  { %v1149_v3 = vpop.eup %1148  ;;  %954 = vmatmul.mubr.f32.vlgmr.msra.gmra.mrb[0].mxu1 %v1147_v60  ;;  %1092 = vmatpush3.bf16.msra.mxu0 %v1089_v28 }
 0x1f9   :  { %956 = vmatprep.mubr.f32.mxu1 %v1149_v3  ;;  %v1151_v4 = vpop.eup %1150  ;;  %1113 = vmatpush3.bf16.msra.mxu1 %v1073_v18 }
 0x1fa   :  { %v1153_v10 = vpop.eup %1152  ;;  %1106 = vmatprep.subr.bf16.mxu1 %v1077_v22  ;;  %1094 = vmatprep.subr.bf16.mxu0 %v1093_v30 }
 0x1fb   :  { %v1155_v13 = vpop.eup %1154 }
 0x1fc   :  { %957 = vmatmul.mubr.f32.gmra.mrb[2].mxu1 %v1151_v4  ;;  %v1157_v14 = vpop.eup %1156  ;;  %1096 = vmatpush3.bf16.msra.mxu0 %v1093_v30 }
 0x1fd   :  { %959 = vmatprep.mubr.f32.mxu1 %v1153_v10  ;;  %v1159_v15 = vpop.eup %1158  ;;  %1114 = vmatpush3.bf16.msra.mxu1 %v1077_v22 }
 0x1fe   :  { %1107 = vmatprep.subr.bf16.mxu1 %v1081_v25  ;;  %1098 = vmatprep.subr.bf16.mxu0 %v1097_v31 }
 0x200   :  { %960 = vmatmul.mubr.f32.gmra.mrb[4].mxu1 %v1155_v13  ;;  %1100 = vmatpush3.bf16.msra.mxu0 %v1097_v31 }
 0x201   :  { %962 = vmatprep.mubr.f32.mxu1 %v1157_v14  ;;  %1115 = vmatpush3.bf16.msra.mxu1 %v1081_v25 }
 0x202   :  { %1108 = vmatprep.subr.bf16.mxu1 %v1085_v62  ;;  %1102 = vmatprep.subr.bf16.mxu0 %v1101_v34 }
 0x204   :  { %963 = vmatmul.mubr.f32.gmra.mrb[6].mxu1 %v1159_v15  ;;  %1104 = vmatpush3.bf16.msra.mxu0 %v1101_v34 }
 0x205   :  { %1116 = vmatpush3.bf16.msra.mxu1 %v1085_v62 }
 0x206   :  { %1109 = vmatprep.subr.bf16.mxu1 %v1089_v28 }
 0x209   :  { %1117 = vmatpush3.bf16.msra.mxu1 %v1089_v28 }
 0x20a   :  { %1110 = vmatprep.subr.bf16.mxu1 %v1093_v30 }
 0x20d   :  { %1118 = vmatpush3.bf16.msra.mxu1 %v1093_v30 }
 0x20e   :  { %1111 = vmatprep.subr.bf16.mxu1 %v1097_v31 }
 0x211   :  { %1119 = vmatpush3.bf16.msra.mxu1 %v1097_v31 }
 0x212   :  { %1112 = vmatprep.subr.bf16.mxu1 %v1101_v34 }
 0x215   :  { %1120 = vmatpush3.bf16.msra.mxu1 %v1101_v34 }
 0x2cb   :  { %v955_v36 = vpop.f32.mrb[0].mxu1 }
 0x2cc   :  { %v598_v37 = vmul.f32 %v955_v36, %v955_v36  ;;  %v542_v38 = vpop.f32.mrb[1].mxu1 }
 0x2cd   :  { %v583_v39 = vadd.f32 %v955_v36, %v542_v38  ;;  %v597_v40 = vmul.f32 %v542_v38, %v542_v38 }
 0x2cf   :  { %v605_v41 = vadd.f32 %v598_v37, %v597_v40  ;;  %v958_v42 = vpop.f32.mrb[2].mxu1 }
 0x2d0   :  { %v552_v43 = vpop.f32.mrb[3].mxu1  ;;  %v600_v47 = vmul.f32 %v958_v42, %v958_v42 }
 0x2d1   :  { %v584_v44 = vadd.f32 %v583_v39, %v552_v43  ;;  %v599_v46 = vmul.f32 %v552_v43, %v552_v43 }
 0x2d3   :  { %v606_v48 = vadd.f32 %v605_v41, %v599_v46  ;;  %v961_v49 = vpop.f32.mrb[4].mxu1  ;;  %v585_v52 = vadd.f32 %v958_v42, %v584_v44 }
 0x2d4   :  { %v562_v53 = vpop.f32.mrb[5].mxu1  ;;  %v602_v57 = vmul.f32 %v961_v49, %v961_v49 }
 0x2d5   :  { %v586_v54 = vadd.f32 %v585_v52, %v562_v53  ;;  %v601_v55 = vmul.f32 %v562_v53, %v562_v53  ;;  %v607_v56 = vadd.f32 %v606_v48, %v600_v47 }
 0x2d7   :  { %v608_v58 = vadd.f32 %v607_v56, %v601_v55  ;;  %v964_v59 = vpop.f32.mrb[6].mxu1  ;;  %v587_v51 = vadd.f32 %v961_v49, %v586_v54  ;;  %v804_v55 = vld [vmem:[#allocation2] ss:$0 sm:$0xff] }
 0x2d8   :  { %v572_v61 = vpop.f32.mrb[7].mxu1  ;;  %v604_v6 = vmul.f32 %v964_v59, %v964_v59 }
 0x2d9   :  { %v588_v63 = vadd.f32 %v587_v51, %v572_v61  ;;  %v603_v0 = vmul.f32 %v572_v61, %v572_v61  ;;  %v609_v5 = vadd.f32 %v608_v58, %v602_v57 }
 0x2db   :  { %v589_v7 = vadd.f32 %v964_v59, %v588_v63  ;;  %v610_v9 = vadd.f32 %v609_v5, %v603_v0 }
 0x2dd   :  { %v590_v12 = vrot.slane %v589_v7, 4  ;;  %v611_v50 = vadd.f32 %v610_v9, %v604_v6 }
 0x2df   :  { %v591_v60 = vadd.f32 %v590_v12, %v589_v7  ;;  %v612_v3 = vrot.slane %v611_v50, 4 }
 0x2e1   :  { %v592_v4 = vrot.slane %v591_v60, 2  ;;  %v613_v10 = vadd.f32 %v612_v3, %v611_v50 }
 0x2e3   :  { %v593_v13 = vadd.f32 %v592_v4, %v591_v60  ;;  %v614_v14 = vrot.slane %v613_v10, 2 }
 0x2e5   :  { %v594_v15 = vrot.slane %v593_v13, 1  ;;  %v615_v16 = vadd.f32 %v614_v14, %v613_v10 }
 0x2e7   :  { %v595_v17 = vadd.f32 %v594_v15, %v593_v13  ;;  %v616_v18 = vrot.slane %v615_v16, 1 }
 0x2e9   :  { %v596_v19 = vmul.f32 0.015625, %v595_v17  ;;  %v617_v21 = vadd.f32 %v616_v18, %v615_v16 }
 0x2eb   :  { %v618_v22 = vmul.f32 0.015625, %v617_v21  ;;  %v619_v23 = vmul.f32 %v596_v19, %v596_v19 }
 0x2ed   :  { %v620_v24 = vsub.f32 %v618_v22, %v619_v23 }
 0x2ef   :  { %v621_v25 = vmax.f32 %v620_v24, 0.0 }
 0x2f1   :  { %v622_v26 = vadd.f32 1e-05, %v621_v25 }
 0x2f3   :  { %1160 = vrsqrt.f32 %v622_v26 }
 0x2fd   :  { %v1161_v62 = vpop.eup %1160 }
 0x2fe   :  { %v624_v2 = vmul.f32 %v1161_v62, %v581_v1 }
 0x300   :  { %v625_v28 = vmul.f32 %v624_v2, %v596_v19  ;;  %v631_v8 = vrot.slane %v624_v2, %v1345_v45 }
 0x302   :  { %v626_v29 = vsub.f32 %v582_v27, %v625_v28  ;;  %v634_v11 = vmul.f32 %v955_v36, %v631_v8  ;;  %v638_v30 = vmul.f32 %v961_v49, %v631_v8  ;;  %v639_v20 = vmul.f32 %v631_v8, %v572_v61 }
 0x303   :  { %v633_v31 = vmul.f32 %v631_v8, %v542_v38  ;;  %v637_v32 = vmul.f32 %v631_v8, %v562_v53  ;;  %v635_v33 = vmul.f32 %v631_v8, %v552_v43  ;;  %v636_v34 = vmul.f32 %v958_v42, %v631_v8 }
 0x304   :  { %v645_v35 = vrot.slane %v626_v29, %v1345_v45  ;;  %v640_v37 = vmul.f32 %v964_v59, %v631_v8 }
 0x306   :  { %v648_v39 = vadd.f32 %v645_v35, %v634_v11  ;;  %v652_v40 = vadd.f32 %v645_v35, %v638_v30  ;;  %v653_v41 = vadd.f32 %v645_v35, %v639_v20  ;;  %v647_v44 = vadd.f32 %v645_v35, %v633_v31 }
 0x307   :  { %v651_v46 = vadd.f32 %v645_v35, %v637_v32  ;;  %v649_v47 = vadd.f32 %v645_v35, %v635_v33  ;;  %v650_v48 = vadd.f32 %v645_v35, %v636_v34  ;;  %v654_v52 = vadd.f32 %v645_v35, %v640_v37 }
 0x308   :  { %1162 = vtanh.f32 %v648_v39 }
 0x309   :  { %1164 = vtanh.f32 %v652_v40 }
 0x30a   :  { %1166 = vtanh.f32 %v647_v44 }
 0x30b   :  { %1168 = vtanh.f32 %v651_v46 }
 0x30c   :  { %1170 = vtanh.f32 %v649_v47 }
 0x30d   :  { %1172 = vtanh.f32 %v653_v41 }
 0x30e   :  { %1174 = vtanh.f32 %v650_v48 }
 0x30f   :  { %1176 = vtanh.f32 %v654_v52 }
 0x312   :  { %v1163_v36 = vpop.eup %1162 }
 0x313   :  { %v1165_v38 = vpop.eup %1164 }
 0x314   :  { %v1167_v45 = vpop.eup %1166 }
 0x315   :  { %v1169_v42 = vpop.eup %1168  ;;  %997 = vmatprep.mubr.f32.mxu0 %v1167_v45 }
 0x316   :  { %v1171_v43 = vpop.eup %1170  ;;  %1003 = vmatprep.mubr.f32.mxu1 %v1169_v42  ;;  %998 = vmatmul.mubr.f32.vlgmr.msra.gmra.mrb[8].mxu0 %v1163_v36 }
 0x317   :  { %v1173_v49 = vpop.eup %1172  ;;  %1004 = vmatmul.mubr.f32.vlgmr.msra.gmra.mrb[8].mxu1 %v1165_v38  ;;  %1000 = vmatprep.mubr.f32.mxu0 %v1171_v43 }
 0x318   :  { %1006 = vmatprep.mubr.f32.mxu1 %v1173_v49  ;;  %v1175_v53 = vpop.eup %1174 }
 0x319   :  { %v1177_v54 = vpop.eup %1176 }
 0x31a   :  { %1001 = vmatmul.mubr.f32.gmra.mrb[10].mxu0 %v1175_v53 }
 0x31b   :  { %1007 = vmatmul.mubr.f32.gmra.mrb[10].mxu1 %v1177_v54 }
 0x3e9   :  { %v999_v56 = vpop.f32.mrb[8].mxu0 }
 0x3ea   :  { %v758_v57 = vadd.f32 %v999_v56, %v804_v55  ;;  %v1005_v58 = vpop.f32.mrb[8].mxu1  ;;  %v752_v59 = vpop.f32.mrb[9].mxu0 }
 0x3eb   :  { %v778_v51 = vadd.f32 %v1005_v58, %v804_v55  ;;  %v753_v61 = vadd.f32 %v804_v55, %v752_v59  ;;  %v772_v63 = vpop.f32.mrb[9].mxu1 }
 0x3ec   :  { %793 = vst.msk [vmem:[%s1555_s13 + $0x8] sm:$0xff] %vm791_vm0, %v758_v57  ;;  %v773_v0 = vadd.f32 %v804_v55, %v772_v63 }
 0x3ed   :  { %797 = vst.msk [vmem:[%s1555_s13 + $0x28] sm:$0xff] %vm791_vm0, %v778_v51  ;;  %792 = vst.msk [vmem:[%s1555_s13] sm:$0xff] %vm791_vm0, %v753_v61  ;;  %v1002_v5 = vpop.f32.mrb[10].mxu0 }
 0x3ee   :  { %796 = vst.msk [vmem:[%s1555_s13 + $0x20] sm:$0xff] %vm791_vm0, %v773_v0  ;;  %v768_v6 = vadd.f32 %v1002_v5, %v804_v55  ;;  %v1008_v7 = vpop.f32.mrb[10].mxu1  ;;  %v762_v9 = vpop.f32.mrb[11].mxu0 }
 0x3ef   :  { %v788_v12 = vadd.f32 %v1008_v7, %v804_v55  ;;  %v763_v50 = vadd.f32 %v804_v55, %v762_v9  ;;  %v782_v60 = vpop.f32.mrb[11].mxu1 }
 0x3f0   :  { %795 = vst.msk [vmem:[%s1555_s13 + $0x18] sm:$0xff] %vm791_vm0, %v768_v6  ;;  %v783_v3 = vadd.f32 %v804_v55, %v782_v60 }
 0x3f1   :  { %799 = vst.msk [vmem:[%s1555_s13 + $0x38] sm:$0xff] %vm791_vm0, %v788_v12  ;;  %794 = vst.msk [vmem:[%s1555_s13 + $0x10] sm:$0xff] %vm791_vm0, %v763_v50 }
 0x3f2   :  { %798 = vst.msk [vmem:[%s1555_s13 + $0x30] sm:$0xff] %vm791_vm0, %v783_v3 }

</bundles_post_ra>
